<compile_context>
chip_gen: v5e
topology: v5e:2x2
jax: 0.10.0
libtpu: 0.0.40
codegen_flags: <defaults>
</compile_context>

<pallas_src>
import jax
import jax.numpy as jnp
from jax.experimental import pallas as pl
from jax.experimental.pallas import tpu as pltpu


def _round_up(v, m):
    return ((v + m - 1) // m) * m


# ---------------------------------------------------------------------------
# Pallas kernel: full per-graph RumorGCN forward (one grid step == one graph).
# ---------------------------------------------------------------------------
def rumor_gcn_kernel(cnt_ref, inv_ref, root_ref,             # scalar prefetch (SMEM)
                     x_ref, a_ref,                           # per-graph blocks (VMEM)
                     w1_ref, b1_ref, w2a_ref, w2b_ref, b2_ref,
                     out_ref):
    f32, bf16 = jnp.float32, jnp.bfloat16
    g = pl.program_id(0)

    x = x_ref[0]                      # [n_tile, fin_pad]  bf16
    a = a_ref[0]                      # [n_tile, n_tile]   bf16 (normalized adjacency)

    n_rows = x.shape[0]
    rows = jax.lax.broadcasted_iota(jnp.int32, (n_rows, 1), 0)
    root_mask = (rows == root_ref[g]).astype(f32)            # this graph's root row
    valid_mask = (rows < cnt_ref[g]).astype(f32)             # real (non-pad) rows

    # conv1: h1 = A_hat @ (X @ W1) + b1   (bf16 MXU inputs, f32 accumulation)
    xw1 = jnp.dot(x, w1_ref[...], preferred_element_type=f32)       # [n_tile, hid_pad]
    h1 = jnp.dot(a, xw1.astype(bf16), preferred_element_type=f32) + b1_ref[...]

    # root_extend(x1): every node of this graph gets the same root feature row,
    # so relu(root_x) @ W2[hid:] is a single row broadcast (no one-hot matmul).
    # The root row is picked with a masked sublane reduce (no extra HBM operand).
    x_root = jnp.sum(x.astype(f32) * root_mask, axis=0, keepdims=True)   # [1, fin_pad]
    re1w = jnp.dot(jnp.maximum(x_root, 0.0).astype(bf16), w2b_ref[...],
                   preferred_element_type=f32)                            # [1, out_pad]

    # relu(cat(h1, root_extend)) @ W2 == relu(h1) @ W2[:hid] + relu(re) @ W2[hid:]
    # TODO(synk): F.dropout is identity in eval mode; training-time random mask
    # not implemented.
    h1_relu = jnp.maximum(h1, 0.0).astype(bf16)
    xw2 = jnp.dot(h1_relu, w2a_ref[...], preferred_element_type=f32) + re1w

    # conv2 propagate + relu
    h2 = jnp.maximum(
        jnp.dot(a, xw2.astype(bf16), preferred_element_type=f32) + b2_ref[...],
        0.0)                                                              # [n_tile, out_pad]

    # root_extend(x2) pooled: scatter_mean of a per-graph-constant row is the row
    # itself -> just the pre-ReLU conv1 output at the root row (masked select).
    h1_root = jnp.sum(h1 * root_mask, axis=0, keepdims=True)             # [1, hid_pad]

    # scatter_mean of h2 over this graph's real nodes (mask out padding rows).
    pooled = jnp.sum(h2 * valid_mask, axis=0, keepdims=True) * inv_ref[g]  # [1, out_pad]

    out_pad = w2a_ref.shape[1]
    out_ref[0, :, :out_pad] = pooled          # 128-aligned, lane-dense stores
    out_ref[0, :, out_pad:] = h1_root


# ---------------------------------------------------------------------------
# Plain-JAX glue: sparse batched graph -> per-graph dense, lane-padded, bf16
# operands.  Runs eagerly (tile size derived from the concrete largest graph).
# ---------------------------------------------------------------------------
def build_operands(x, edge_index, batch, root_index, w1, b1, w2, b2, num_graphs):
    f32, bf16 = jnp.float32, jnp.bfloat16
    N, fin = x.shape
    hid = w1.shape[1]
    out_feats = w2.shape[1]
    B = num_graphs

    counts = jnp.zeros((B,), jnp.int32).at[batch].add(1)            # nodes per graph
    # static pad sizes: node tile -> bf16 sublane pack (16), features -> lanes (128)
    n_tile = max(_round_up(int(jnp.max(counts)), 16), 16)
    fin_pad = _round_up(fin, 128)
    hid_pad = _round_up(hid, 128)
    out_pad = _round_up(out_feats, 128)

    # local (within-graph) index of every node; robust to arbitrary node order
    csum = jnp.cumsum(jax.nn.one_hot(batch, B, dtype=jnp.int32), axis=0)
    local = csum[jnp.arange(N), batch] - 1                          # [N]

    # per-graph padded feature blocks [B, n_tile, fin_pad]
    x_pad = jnp.zeros((N, fin_pad), f32).at[:, :fin].set(x.astype(f32))
    x_blocks = jnp.zeros((B, n_tile, fin_pad), f32).at[batch, local].set(x_pad)

    # per-graph symmetric-normalized adjacency with self-loops (GCNConv norm)
    src, dst = edge_index[0], edge_index[1]
    a_blocks = jnp.zeros((B, n_tile, n_tile), f32)
    a_blocks = a_blocks.at[batch[dst], local[dst], local[src]].add(1.0)
    a_blocks = a_blocks.at[batch, local, local].add(1.0)            # self-loops (real nodes)
    deg = a_blocks.sum(axis=2)
    dinv = jnp.where(deg > 0, jax.lax.rsqrt(deg), 0.0)
    a_blocks = a_blocks * dinv[:, :, None] * dinv[:, None, :]

    # per-graph local root index (scalar-prefetched into SMEM by the kernel)
    root_local = local[root_index].astype(jnp.int32)                 # [B]

    inv_counts = jnp.where(counts > 0,
                           1.0 / jnp.maximum(counts, 1).astype(f32), 0.0)

    # padded weights; conv2 weight split into the h1-part and the root_extend-part
    w1_p = jnp.zeros((fin_pad, hid_pad), f32).at[:fin, :hid].set(w1.astype(f32))
    w2a_p = jnp.zeros((hid_pad, out_pad), f32).at[:hid, :out_feats].set(w2[:hid].astype(f32))
    w2b_p = jnp.zeros((fin_pad, out_pad), f32).at[:fin, :out_feats].set(w2[hid:].astype(f32))
    b1_p = jnp.zeros((1, hid_pad), f32).at[0, :hid].set(b1.astype(f32))
    b2_p = jnp.zeros((1, out_pad), f32).at[0, :out_feats].set(b2.astype(f32))

    return dict(
        counts=counts, inv_counts=inv_counts, root_local=root_local,
        x_blocks=x_blocks.astype(bf16), a_blocks=a_blocks.astype(bf16),
        w1=w1_p.astype(bf16), w2a=w2a_p.astype(bf16), w2b=w2b_p.astype(bf16),
        b1=b1_p, b2=b2_p,
        n_tile=n_tile, fin_pad=fin_pad, hid_pad=hid_pad, out_pad=out_pad,
        hid=hid, out_feats=out_feats, num_graphs=B,
    )


def rumor_gcn_pallas(ops):
    B = ops["num_graphs"]
    n_tile, fin_pad = ops["n_tile"], ops["fin_pad"]
    hid_pad, out_pad = ops["hid_pad"], ops["out_pad"]
    d_pad = out_pad + hid_pad

    # explicit VMEM budget: double-buffered per-graph tiles + weights + intermediates
    tile_b = (n_tile * fin_pad + n_tile * n_tile) * 2 + d_pad * 4
    weight_b = (fin_pad * hid_pad + hid_pad * out_pad + fin_pad * out_pad) * 2 \
               + (hid_pad + out_pad) * 4
    interm_b = n_tile * (fin_pad + 3 * hid_pad + 3 * out_pad) * 4
    vmem_limit = int(min(2 * tile_b + 2 * weight_b + interm_b + (8 << 20), 64 << 20))

    grid_spec = pltpu.PrefetchScalarGridSpec(
        num_scalar_prefetch=3,                       # counts, inv_counts, root_local -> SMEM
        grid=(B,),                                   # one grid step per graph
        in_specs=[
            pl.BlockSpec((1, n_tile, fin_pad), lambda g, c, i, r: (g, 0, 0)),  # X block
            pl.BlockSpec((1, n_tile, n_tile), lambda g, c, i, r: (g, 0, 0)),   # A_hat block
            pl.BlockSpec((fin_pad, hid_pad), lambda g, c, i, r: (0, 0)),       # W1
            pl.BlockSpec((1, hid_pad), lambda g, c, i, r: (0, 0)),             # b1
            pl.BlockSpec((hid_pad, out_pad), lambda g, c, i, r: (0, 0)),       # W2[:hid]
            pl.BlockSpec((fin_pad, out_pad), lambda g, c, i, r: (0, 0)),       # W2[hid:]
            pl.BlockSpec((1, out_pad), lambda g, c, i, r: (0, 0)),             # b2
        ],
        out_specs=pl.BlockSpec((1, 1, d_pad), lambda g, c, i, r: (g, 0, 0)),
    )

    out = pl.pallas_call(
        rumor_gcn_kernel,
        out_shape=jax.ShapeDtypeStruct((B, 1, d_pad), jnp.float32),
        grid_spec=grid_spec,
        compiler_params=pltpu.CompilerParams(
            dimension_semantics=("parallel",),       # graphs shard across v7x's 2 TCs
            vmem_limit_bytes=vmem_limit),
    )(ops["counts"], ops["inv_counts"], ops["root_local"],
      ops["x_blocks"], ops["a_blocks"],
      ops["w1"], ops["b1"], ops["w2a"], ops["w2b"], ops["b2"])
    return out.reshape(B, d_pad)


def rumor_gcn_forward(x, edge_index, batch, root_index, w1, b1, w2, b2, num_graphs):
    """RumorGCN.forward (eval mode): returns [num_graphs, out_feats + hid_feats]."""
    ops = build_operands(x, edge_index, batch, root_index, w1, b1, w2, b2, num_graphs)
    out_padded = rumor_gcn_pallas(ops)
    out_pad, hid, out_feats = ops["out_pad"], ops["hid"], ops["out_feats"]
    return jnp.concatenate(
        [out_padded[:, :out_feats], out_padded[:, out_pad:out_pad + hid]], axis=1)


# ---------------------------------------------------------------------------
# References for the correctness check.
# ---------------------------------------------------------------------------
def rumor_gcn_block_reference(ops):
    """Pure-JAX reference on the same padded bf16 operands, mirroring the
    kernel's precision choices (bf16 MXU inputs, f32 accumulation)."""
    f32, bf16 = jnp.float32, jnp.bfloat16
    x = ops["x_blocks"].astype(f32)
    a = ops["a_blocks"].astype(f32)
    w1, w2a, w2b = (ops[k].astype(f32) for k in ("w1", "w2a", "w2b"))
    b1, b2 = ops["b1"], ops["b2"]
    B = x.shape[0]
    gids = jnp.arange(B)
    rl = ops["root_local"]

    xw1 = jnp.einsum("bnf,fh->bnh", x, w1).astype(bf16).astype(f32)
    h1 = jnp.einsum("bnm,bmh->bnh", a, xw1) + b1
    x_root = x[gids, rl]                                              # [B, fin_pad]
    re1w = (jnp.maximum(x_root, 0.0).astype(bf16).astype(f32) @ w2b)[:, None, :]
    h1_relu = jnp.maximum(h1, 0.0).astype(bf16).astype(f32)
    xw2 = (jnp.einsum("bnh,ho->bno", h1_relu, w2a) + re1w).astype(bf16).astype(f32)
    h2 = jnp.maximum(jnp.einsum("bnm,bmo->bno", a, xw2) + b2, 0.0)
    h1_root = h1[gids, rl]                                            # [B, hid_pad]

    n = x.shape[1]
    valid = (jnp.arange(n)[None, :, None] < ops["counts"][:, None, None]).astype(f32)
    pooled = (h2 * valid).sum(axis=1) * ops["inv_counts"][:, None]
    return jnp.concatenate([pooled, h1_root], axis=1)                 # [B, d_pad]


def rumor_gcn_dense_reference(x, edge_index, batch, root_index, w1, b1, w2, b2, num_graphs):
    """Full-f32 dense reference of the original (global N x N) formulation."""
    N = x.shape[0]
    B = num_graphs
    xf = x.astype(jnp.float32)
    src, dst = edge_index[0], edge_index[1]
    adj = jnp.zeros((N, N), jnp.float32).at[dst, src].add(1.0) + jnp.eye(N)
    dinv = 1.0 / jnp.sqrt(adj.sum(axis=1))
    ahat = adj * dinv[:, None] * dinv[None, :]
    s_mat = jax.nn.one_hot(root_index[batch], N, dtype=jnp.float32)
    onehot_b = jax.nn.one_hot(batch, B, dtype=jnp.float32)
    p_mat = (onehot_b / onehot_b.sum(axis=0)[None, :]).T
    h1 = ahat @ (xf @ w1) + b1
    re1 = s_mat @ xf
    c = jnp.maximum(jnp.concatenate([h1, re1], axis=1), 0.0)
    h2 = jnp.maximum(ahat @ (c @ w2) + b2, 0.0)
    re2 = s_mat @ h1
    return p_mat @ jnp.concatenate([h2, re2], axis=1)


if __name__ == "__main__":
    # Small deterministic problem: 2 graphs x 8 nodes = 16 nodes.
    N, B = 16, 2
    in_feats, hid_feats, out_feats = 8, 16, 16

    key = jax.random.PRNGKey(0)
    kx, kw1, kw2 = jax.random.split(key, 3)

    x = jax.random.normal(kx, (N, in_feats), dtype=jnp.float32)

    # two identical 8-node trees (second graph offset by 8); edges parent -> child
    tree = jnp.array([[0, 0, 1, 1, 2, 2, 3],
                      [1, 2, 3, 4, 5, 6, 7]], dtype=jnp.int32)
    edge_index = jnp.concatenate([tree, tree + 8], axis=1)           # [2, 14]
    batch = jnp.array([0] * 8 + [1] * 8, dtype=jnp.int32)            # [16]
    root_index = jnp.array([0, 8], dtype=jnp.int32)                  # [2]

    # deterministic parameters (GCNConv: weight [in, out], bias [out])
    w1 = jax.random.normal(kw1, (in_feats, hid_feats), dtype=jnp.float32) * 0.1
    b1 = jnp.zeros((hid_feats,), dtype=jnp.float32)
    w2 = jax.random.normal(kw2, (hid_feats + in_feats, out_feats),
                           dtype=jnp.float32) * 0.1
    b2 = jnp.zeros((out_feats,), dtype=jnp.float32)

    out = rumor_gcn_forward(x, edge_index, batch, root_index,
                            w1, b1, w2, b2, num_graphs=B)
    out = jax.block_until_ready(out)
    assert out.shape == (B, out_feats + hid_feats)

    # 1) precision-mirrored reference on the same bf16 block operands (tight)
    ops = build_operands(x, edge_index, batch, root_index, w1, b1, w2, b2, B)
    ref_blk = rumor_gcn_block_reference(ops)
    ref_blk = jnp.concatenate(
        [ref_blk[:, :out_feats],
         ref_blk[:, ops["out_pad"]:ops["out_pad"] + hid_feats]], axis=1)
    assert jnp.allclose(out, ref_blk, atol=1e-2, rtol=1e-2), \
        f"block-ref max err {jnp.max(jnp.abs(out - ref_blk))}"

    # 2) full-f32 dense reference of the original formulation (loose: bf16 kernel)
    ref_f32 = rumor_gcn_dense_reference(x, edge_index, batch, root_index,
                                        w1, b1, w2, b2, B)
    assert jnp.allclose(out, ref_f32, atol=5e-2, rtol=5e-2), \
        f"f32-ref max err {jnp.max(jnp.abs(out - ref_f32))}"

    print("KERNEL_OK")
</pallas_src>

<mosaic_0001>
module attributes {stable_mosaic.version = 11 : i64} {
  func.func @rumor_gcn_kernel(%arg0: i32, %arg1: memref<2xi32, #tpu.memory_space<smem>>, %arg2: memref<2xf32, #tpu.memory_space<smem>>, %arg3: memref<2xi32, #tpu.memory_space<smem>>, %arg4: memref<1x16x128xbf16, #tpu.memory_space<vmem>>, %arg5: memref<1x16x16xbf16, #tpu.memory_space<vmem>>, %arg6: memref<128x128xbf16, #tpu.memory_space<vmem>>, %arg7: memref<1x128xf32, #tpu.memory_space<vmem>>, %arg8: memref<128x128xbf16, #tpu.memory_space<vmem>>, %arg9: memref<128x128xbf16, #tpu.memory_space<vmem>>, %arg10: memref<1x128xf32, #tpu.memory_space<vmem>>, %arg11: memref<1x1x256xf32, #tpu.memory_space<vmem>>) attributes {dimension_semantics = [#tpu.dimension_semantics<parallel>], iteration_bounds = array<i64: 2>, scalar_prefetch = 3 : i64, scratch_operands = 0 : i64, tpu.core_type = #tpu.core_type<tc>, window_params = [{transform_indices = @transform_0, window_bounds = array<i64: 1, 16, 128>}, {transform_indices = @transform_1, window_bounds = array<i64: 1, 16, 16>}, {pipeline_mode = #tpu.pipeline_mode<synchronous>, transform_indices = @transform_2, window_bounds = array<i64: 128, 128>}, {pipeline_mode = #tpu.pipeline_mode<synchronous>, transform_indices = @transform_3, window_bounds = array<i64: 1, 128>}, {pipeline_mode = #tpu.pipeline_mode<synchronous>, transform_indices = @transform_4, window_bounds = array<i64: 128, 128>}, {pipeline_mode = #tpu.pipeline_mode<synchronous>, transform_indices = @transform_5, window_bounds = array<i64: 128, 128>}, {pipeline_mode = #tpu.pipeline_mode<synchronous>, transform_indices = @transform_6, window_bounds = array<i64: 1, 128>}, {transform_indices = @transform_7, window_bounds = array<i64: 1, 1, 256>}]} {
    %c0 = arith.constant 0 : index
    %c0_0 = arith.constant 0 : index
    %c0_1 = arith.constant 0 : index
    %0 = vector.load %arg4[%c0, %c0_0, %c0_1] : memref<1x16x128xbf16, #tpu.memory_space<vmem>>, vector<1x16x128xbf16>
    %1 = vector.shape_cast %0 : vector<1x16x128xbf16> to vector<16x128xbf16>
    %c0_2 = arith.constant 0 : index
    %c0_3 = arith.constant 0 : index
    %c0_4 = arith.constant 0 : index
    %2 = vector.load %arg5[%c0_2, %c0_3, %c0_4] : memref<1x16x16xbf16, #tpu.memory_space<vmem>>, vector<1x16x16xbf16>
    %3 = vector.shape_cast %2 : vector<1x16x16xbf16> to vector<16x16xbf16>
    %4 = tpu.iota {dimensions = array<i32: 0>} : vector<16x1xi32>
    %5 = arith.index_cast %arg0 : i32 to index
    %6 = memref.load %arg3[%5] : memref<2xi32, #tpu.memory_space<smem>>
    %7 = vector.broadcast %6 : i32 to vector<16x1xi32>
    %8 = arith.cmpi eq, %4, %7 : vector<16x1xi32>
    %9 = arith.extui %8 : vector<16x1xi1> to vector<16x1xi32>
    %10 = arith.sitofp %9 : vector<16x1xi32> to vector<16x1xf32>
    %11 = arith.index_cast %arg0 : i32 to index
    %12 = memref.load %arg1[%11] : memref<2xi32, #tpu.memory_space<smem>>
    %13 = vector.broadcast %12 : i32 to vector<16x1xi32>
    %14 = arith.cmpi slt, %4, %13 : vector<16x1xi32>
    %15 = arith.extui %14 : vector<16x1xi1> to vector<16x1xi32>
    %16 = arith.sitofp %15 : vector<16x1xi32> to vector<16x1xf32>
    %c0_5 = arith.constant 0 : index
    %c0_6 = arith.constant 0 : index
    %17 = vector.load %arg6[%c0_5, %c0_6] : memref<128x128xbf16, #tpu.memory_space<vmem>>, vector<128x128xbf16>
    %cst = arith.constant dense<0.000000e+00> : vector<16x128xf32>
    %18 = tpu.matmul %1, %17, %cst {dimension_numbers = #tpu.dot_dimension_numbers<[1], [0], [0], [1], [0, 0, 1, 1], [], []>} : vector<16x128xbf16>, vector<128x128xbf16>, vector<16x128xf32> -> vector<16x128xf32>
    %19 = arith.truncf %18 : vector<16x128xf32> to vector<16x128xbf16>
    %cst_7 = arith.constant dense<0.000000e+00> : vector<16x128xf32>
    %20 = tpu.matmul %3, %19, %cst_7 {dimension_numbers = #tpu.dot_dimension_numbers<[1], [0], [0], [1], [0, 0, 1, 1], [], []>} : vector<16x16xbf16>, vector<16x128xbf16>, vector<16x128xf32> -> vector<16x128xf32>
    %c0_8 = arith.constant 0 : index
    %c0_9 = arith.constant 0 : index
    %21 = vector.load %arg7[%c0_8, %c0_9] : memref<1x128xf32, #tpu.memory_space<vmem>>, vector<1x128xf32>
    %22 = vector.broadcast %21 : vector<1x128xf32> to vector<16x128xf32>
    %23 = arith.addf %20, %22 : vector<16x128xf32>
    %24 = arith.extf %1 : vector<16x128xbf16> to vector<16x128xf32>
    %25 = vector.broadcast %10 : vector<16x1xf32> to vector<16x128xf32>
    %26 = arith.mulf %24, %25 : vector<16x128xf32>
    %cst_10 = arith.constant dense<0.000000e+00> : vector<128xf32>
    %27 = vector.multi_reduction <add>, %26, %cst_10 [0] : vector<16x128xf32> to vector<128xf32>
    %28 = vector.shape_cast %27 : vector<128xf32> to vector<1x128xf32>
    %cst_11 = arith.constant 0.000000e+00 : f32
    %29 = vector.broadcast %cst_11 : f32 to vector<1x128xf32>
    %30 = arith.maximumf %28, %29 : vector<1x128xf32>
    %31 = arith.truncf %30 : vector<1x128xf32> to vector<1x128xbf16>
    %c0_12 = arith.constant 0 : index
    %c0_13 = arith.constant 0 : index
    %32 = vector.load %arg9[%c0_12, %c0_13] : memref<128x128xbf16, #tpu.memory_space<vmem>>, vector<128x128xbf16>
    %cst_14 = arith.constant dense<0.000000e+00> : vector<1x128xf32>
    %33 = tpu.matmul %31, %32, %cst_14 {dimension_numbers = #tpu.dot_dimension_numbers<[1], [0], [0], [1], [0, 0, 1, 1], [], []>} : vector<1x128xbf16>, vector<128x128xbf16>, vector<1x128xf32> -> vector<1x128xf32>
    %cst_15 = arith.constant 0.000000e+00 : f32
    %34 = vector.broadcast %cst_15 : f32 to vector<16x128xf32>
    %35 = arith.maximumf %23, %34 : vector<16x128xf32>
    %36 = arith.truncf %35 : vector<16x128xf32> to vector<16x128xbf16>
    %c0_16 = arith.constant 0 : index
    %c0_17 = arith.constant 0 : index
    %37 = vector.load %arg8[%c0_16, %c0_17] : memref<128x128xbf16, #tpu.memory_space<vmem>>, vector<128x128xbf16>
    %cst_18 = arith.constant dense<0.000000e+00> : vector<16x128xf32>
    %38 = tpu.matmul %36, %37, %cst_18 {dimension_numbers = #tpu.dot_dimension_numbers<[1], [0], [0], [1], [0, 0, 1, 1], [], []>} : vector<16x128xbf16>, vector<128x128xbf16>, vector<16x128xf32> -> vector<16x128xf32>
    %39 = vector.broadcast %33 : vector<1x128xf32> to vector<16x128xf32>
    %40 = arith.addf %38, %39 : vector<16x128xf32>
    %41 = arith.truncf %40 : vector<16x128xf32> to vector<16x128xbf16>
    %cst_19 = arith.constant dense<0.000000e+00> : vector<16x128xf32>
    %42 = tpu.matmul %3, %41, %cst_19 {dimension_numbers = #tpu.dot_dimension_numbers<[1], [0], [0], [1], [0, 0, 1, 1], [], []>} : vector<16x16xbf16>, vector<16x128xbf16>, vector<16x128xf32> -> vector<16x128xf32>
    %c0_20 = arith.constant 0 : index
    %c0_21 = arith.constant 0 : index
    %43 = vector.load %arg10[%c0_20, %c0_21] : memref<1x128xf32, #tpu.memory_space<vmem>>, vector<1x128xf32>
    %44 = vector.broadcast %43 : vector<1x128xf32> to vector<16x128xf32>
    %45 = arith.addf %42, %44 : vector<16x128xf32>
    %cst_22 = arith.constant 0.000000e+00 : f32
    %46 = vector.broadcast %cst_22 : f32 to vector<16x128xf32>
    %47 = arith.maximumf %45, %46 : vector<16x128xf32>
    %48 = vector.broadcast %10 : vector<16x1xf32> to vector<16x128xf32>
    %49 = arith.mulf %23, %48 : vector<16x128xf32>
    %cst_23 = arith.constant dense<0.000000e+00> : vector<128xf32>
    %50 = vector.multi_reduction <add>, %49, %cst_23 [0] : vector<16x128xf32> to vector<128xf32>
    %51 = vector.shape_cast %50 : vector<128xf32> to vector<1x128xf32>
    %52 = vector.broadcast %16 : vector<16x1xf32> to vector<16x128xf32>
    %53 = arith.mulf %47, %52 : vector<16x128xf32>
    %cst_24 = arith.constant dense<0.000000e+00> : vector<128xf32>
    %54 = vector.multi_reduction <add>, %53, %cst_24 [0] : vector<16x128xf32> to vector<128xf32>
    %55 = vector.shape_cast %54 : vector<128xf32> to vector<1x128xf32>
    %56 = arith.index_cast %arg0 : i32 to index
    %57 = memref.load %arg2[%56] : memref<2xf32, #tpu.memory_space<smem>>
    %58 = vector.broadcast %57 : f32 to vector<1x128xf32>
    %59 = arith.mulf %55, %58 : vector<1x128xf32>
    %c0_25 = arith.constant 0 : index
    %c0_26 = arith.constant 0 : index
    %c0_27 = arith.constant 0 : index
    %60 = vector.load %arg11[%c0_25, %c0_26, %c0_27] : memref<1x1x256xf32, #tpu.memory_space<vmem>>, vector<1x1x128xf32>
    %61 = vector.shape_cast %60 : vector<1x1x128xf32> to vector<1x128xf32>
    %62 = vector.shape_cast %59 : vector<1x128xf32> to vector<1x1x128xf32>
    tpu.vector_store %arg11[%c0_25, %c0_26, %c0_27], %62 {strides = array<i32>} : memref<1x1x256xf32, #tpu.memory_space<vmem>>, vector<1x1x128xf32>,
    %c0_28 = arith.constant 0 : index
    %c0_29 = arith.constant 0 : index
    %c128 = arith.constant 128 : index
    %63 = vector.load %arg11[%c0_28, %c0_29, %c128] : memref<1x1x256xf32, #tpu.memory_space<vmem>>, vector<1x1x128xf32>
    %64 = vector.shape_cast %63 : vector<1x1x128xf32> to vector<1x128xf32>
    %65 = vector.shape_cast %51 : vector<1x128xf32> to vector<1x1x128xf32>
    tpu.vector_store %arg11[%c0_28, %c0_29, %c128], %65 {strides = array<i32>} : memref<1x1x256xf32, #tpu.memory_space<vmem>>, vector<1x1x128xf32>,
    return
  }
  func.func @transform_0(%arg0: i32, %arg1: memref<2xi32, #tpu.memory_space<smem>>, %arg2: memref<2xf32, #tpu.memory_space<smem>>, %arg3: memref<2xi32, #tpu.memory_space<smem>>) -> (i32, i32, i32) {
    %c0_i32 = arith.constant 0 : i32
    %c0_i32_0 = arith.constant 0 : i32
    %c0_i32_1 = arith.constant 0 : i32
    return %arg0, %c0_i32, %c0_i32_0 : i32, i32, i32
  }
  func.func @transform_1(%arg0: i32, %arg1: memref<2xi32, #tpu.memory_space<smem>>, %arg2: memref<2xf32, #tpu.memory_space<smem>>, %arg3: memref<2xi32, #tpu.memory_space<smem>>) -> (i32, i32, i32) {
    %c0_i32 = arith.constant 0 : i32
    %c0_i32_0 = arith.constant 0 : i32
    %c0_i32_1 = arith.constant 0 : i32
    return %arg0, %c0_i32, %c0_i32_0 : i32, i32, i32
  }
  func.func @transform_2(%arg0: i32, %arg1: memref<2xi32, #tpu.memory_space<smem>>, %arg2: memref<2xf32, #tpu.memory_space<smem>>, %arg3: memref<2xi32, #tpu.memory_space<smem>>) -> (i32, i32) {
    %c0_i32 = arith.constant 0 : i32
    %c0_i32_0 = arith.constant 0 : i32
    %c0_i32_1 = arith.constant 0 : i32
    return %c0_i32, %c0_i32_0 : i32, i32
  }
  func.func @transform_3(%arg0: i32, %arg1: memref<2xi32, #tpu.memory_space<smem>>, %arg2: memref<2xf32, #tpu.memory_space<smem>>, %arg3: memref<2xi32, #tpu.memory_space<smem>>) -> (i32, i32) {
    %c0_i32 = arith.constant 0 : i32
    %c0_i32_0 = arith.constant 0 : i32
    %c0_i32_1 = arith.constant 0 : i32
    return %c0_i32, %c0_i32_0 : i32, i32
  }
  func.func @transform_4(%arg0: i32, %arg1: memref<2xi32, #tpu.memory_space<smem>>, %arg2: memref<2xf32, #tpu.memory_space<smem>>, %arg3: memref<2xi32, #tpu.memory_space<smem>>) -> (i32, i32) {
    %c0_i32 = arith.constant 0 : i32
    %c0_i32_0 = arith.constant 0 : i32
    %c0_i32_1 = arith.constant 0 : i32
    return %c0_i32, %c0_i32_0 : i32, i32
  }
  func.func @transform_5(%arg0: i32, %arg1: memref<2xi32, #tpu.memory_space<smem>>, %arg2: memref<2xf32, #tpu.memory_space<smem>>, %arg3: memref<2xi32, #tpu.memory_space<smem>>) -> (i32, i32) {
    %c0_i32 = arith.constant 0 : i32
    %c0_i32_0 = arith.constant 0 : i32
    %c0_i32_1 = arith.constant 0 : i32
    return %c0_i32, %c0_i32_0 : i32, i32
  }
  func.func @transform_6(%arg0: i32, %arg1: memref<2xi32, #tpu.memory_space<smem>>, %arg2: memref<2xf32, #tpu.memory_space<smem>>, %arg3: memref<2xi32, #tpu.memory_space<smem>>) -> (i32, i32) {
    %c0_i32 = arith.constant 0 : i32
    %c0_i32_0 = arith.constant 0 : i32
    %c0_i32_1 = arith.constant 0 : i32
    return %c0_i32, %c0_i32_0 : i32, i32
  }
  func.func @transform_7(%arg0: i32, %arg1: memref<2xi32, #tpu.memory_space<smem>>, %arg2: memref<2xf32, #tpu.memory_space<smem>>, %arg3: memref<2xi32, #tpu.memory_space<smem>>) -> (i32, i32, i32) {
    %c0_i32 = arith.constant 0 : i32
    %c0_i32_0 = arith.constant 0 : i32
    %c0_i32_1 = arith.constant 0 : i32
    return %arg0, %c0_i32, %c0_i32_0 : i32, i32, i32
  }
}

</mosaic_0001>

<bundles_post_ra>
// kernel: tpu_custom_call.1
= control target key start
LH: loop header
LB: loop body
LE: loop exit
PB: predicated region body
PF: predicated region fallthrough
CT: control target
= control target key end

     0   :  { %s1423_s19 = smov [#allocation3]   ;;  %s1424_s20 = smov [#allocation4]   ;;  %s1746_s0 = inlined_call_operand.hbm [shape: s32[2], index: 0, kind: input, shape index: {}]   ;;  %s1747_s3 = inlined_call_operand.hbm [shape: bf16[2,16,128], index: 3, kind: input, shape index: {}]   ;;  %s1748_s4 = inlined_call_operand.hbm [shape: bf16[2,16,16], index: 4, kind: input, shape index: {}]   ;;  %s1749_s5 = inlined_call_operand.hbm [shape: bf16[128,128], index: 5, kind: input, shape index: {}]   ;;  %s1750_s6 = inlined_call_operand.vmem [shape: f32[1,128], index: 6, kind: input, shape index: {}]   ;;  %s1751_s7 = inlined_call_operand.hbm [shape: bf16[128,128], index: 7, kind: input, shape index: {}]   ;;  %s1752_s8 = inlined_call_operand.hbm [shape: bf16[128,128], index: 8, kind: input, shape index: {}]   ;;  %s1753_s9 = inlined_call_operand.vmem [shape: f32[1,128], index: 9, kind: input, shape index: {}]   ;;  %s1754_s10 = inlined_call_operand.hbm [shape: f32[2,1,256], index: 10, kind: output, shape index: {}]   ;;  %s1755_s1 = inlined_call_operand.hbm [shape: f32[2], index: 1, kind: input, shape index: {}]   ;;  %s1756_s2 = inlined_call_operand.vmem [shape: s32[2], index: 2, kind: input, shape index: {}]  }
   0x1   :  { %1761 = sst [smem:[#allocation23_spill]] %s1747_s3  ;;  %s16_s15 = sshll.u32 %s1746_s0, 4  ;;  %s17_s15 = int_to_ptr.hbm [resolvable:$true] %s16_s15 }
   0x2   :  { %1762 = sst [smem:[#allocation24_spill]] %s1749_s5  ;;  %s21_s18 = sshll.u32 %s1755_s1, 4  ;;  %s22_s18 = int_to_ptr.hbm [resolvable:$true] %s21_s18 }
   0x3   :  { %1763 = sst [smem:[#allocation25_spill]] %s1751_s7  ;;  %s26_s23 = sshll.u32 %s1756_s2, 4  ;;  %s27_s23 = int_to_ptr.vmem [resolvable:$true] %s26_s23 }
   0x4   :  { %1764 = sst [smem:[#allocation26_spill]] %s1752_s8  ;;  %s1425_s24 = smov [#allocation5]  }
   0x5   :  { %19 = dma.hbm_to_smem %s17_s15, 16, %s1423_s19, [#allocation2] }
   0x6   :  { %24 = dma.hbm_to_smem %s22_s18, 16, %s1424_s20, [#allocation2] }
   0x7   :  { %29 = dma.vmem_to_smem %s27_s23, 16, %s1425_s24, [#allocation2] }
   0x8   :  { %1385 = dma.done.wait [#allocation2], 48 }
   0x9   :  { %1386 = vsyncadd [#allocation2], 4294967248 }
   0xa   :  { %32 = sfence }
   0xb   :  { %33 = vsyncpa [#allocation7], 0 }
   0xc   :  { %35 = vsyncpa [#allocation7 + $0x1], 0 }
   0xd   :  { %36 = vsyncpa [#allocation10], 0 }
   0xe   :  { %38 = vsyncpa [#allocation10 + $0x1], 0 }
   0xf   :  { %39 = vsyncpa [#allocation13], 0 }
  0x10   :  { %40 = vsyncpa [#allocation8], 0 }
  0x11   :  { %42 = vsyncpa [#allocation8 + $0x1], 0  ;;  %s1496_s0 = smov 0   ;;  %s1498_s1 = smov 0  }
  0x12   :  { %s1500_s25 = smov 0   ;;  %s1502_s2 = smov 0  }
  0x13 LB: > { %s1517_s26 = sadd.s32 4294967295, %s1421_s2   ;;  %s904_s27 = sadd.s32 4294967294, %s1421_s2   ;;  %s1421_s2 = sphi %s1502_s2, %s1785_s2   ;;  %s1417_s25 = sphi %s1500_s25, %s1784_s25   ;;  %s1413_s1 = sphi %s1498_s1, %s1783_s1   ;;  %s1409_s0 = sphi %s1496_s0, %s1782_s0  }
  0x14   : > { %p68_p0 = scmp.ne.s32.totalorder %s1413_s1, %s1409_s0  ;;  %p69_p1 = scmp.eq.s32.totalorder %s1517_s26, 0 }
  0x15   : > { %p223_p2 = scmp.eq.s32.totalorder %s1517_s26, 1  ;;  %p229_p3 = scmp.eq.s32.totalorder %s904_s27, 1 }
  0x16   : > { %p1526_p4 = por %p69_p1, %p68_p0  ;;  %p905_p5 = scmp.ge.s32.totalorder %s1421_s2, 1 }
  0x17   : > { %p1531_p6 = por %p229_p3, %p68_p0  ;;  %p236_p7 = scmp.lt.s32.totalorder %s1421_s2, 3 }
  0x18   : > { %s1767_s5 = sld [smem:[#allocation24_spill]]  ;;  %s1426_s14 = smov [#allocation11]  }
  0x19   : > { %p1539_p8 = pnand %p905_p5, %p236_p7  ;;  %s249_s15 = sshll.u32 %s1426_s14, 4  ;;  %s250_s15 = int_to_ptr.vmem [resolvable:$true] %s249_s15 }
  0x1a   : > { %s1770_s7 = sld [smem:[#allocation25_spill]]  ;;  %s1757_s20 = smov 64  }
  0x1b   : > { %p1083_p9 = pneg %p1539_p8  ;;  %s1759_s21 = smov 4  }
  0x1c   : > { %s1429_s22 = smov [#allocation12]   ;;  %s1771_s8 = sld [smem:[#allocation26_spill]] }
  0x1d   : > { %p1547_p10 = pnand %p1083_p9, %p69_p1  ;;  %s266_s23 = sshll.u32 %s1429_s22, 4  ;;  %s267_s23 = int_to_ptr.vmem [resolvable:$true] %s266_s23 }
  0x1e   : > { %s247_s12 = sshll.u32 %s1767_s5, 4  ;;  %s1430_s11 = smov [#allocation14]   ;;  %s248_s12 = int_to_ptr.hbm [resolvable:$true] %s247_s12 }
  0x1f   : > { %1086 = dma.hbm_to_vmem [thread:$0]  (!%p1547_p10), %s248_s12, 1024, %s250_s15, [#allocation10], %s1757_s20, %s1757_s20, %s1759_s21  }
  0x20   : > { %s264_s19 = sshll.u32 %s1770_s7, 4  ;;  %s280_s12 = sshll.u32 %s1430_s11, 4  ;;  %s265_s19 = int_to_ptr.hbm [resolvable:$true] %s264_s19  ;;  %s281_s12 = int_to_ptr.vmem [resolvable:$true] %s280_s12 }
  0x21   : > { %1089 = dma.hbm_to_vmem [thread:$0]  (!%p1547_p10), %s265_s19, 1024, %s267_s23, [#allocation13], %s1757_s20, %s1757_s20, %s1759_s21  }
  0x22   : > { %s278_s30 = sshll.u32 %s1771_s8, 4  ;;  %s1569_s14 = sadd.s32 1, %s1421_s2   ;;  %s279_s30 = int_to_ptr.hbm [resolvable:$true] %s278_s30 }
  0x23   : > { %1092 = dma.hbm_to_vmem [thread:$0]  (!%p1547_p10), %s279_s30, 1024, %s281_s12, [#allocation13], %s1757_s20, %s1757_s20, %s1759_s21  }
  0x24   : > { %s52_s15 = ssub.s32 %s1421_s2, %s1569_s14  ;;  %s55_s17 = sadd.s32 1, %s1417_s25 }
  0x25   : > { %p53_p12 = scmp.eq.s32.totalorder %s52_s15, 0  ;;  %p62_p13 = scmp.ne.s32.totalorder %s1417_s25, %s1413_s1 }
  0x26   : > { %p63_p0 = scmp.eq.s32.totalorder %s1421_s2, 0  ;;  %p1107_p3 = scmp.lt.s32.totalorder %s1421_s2, 2 }
  0x27   : > { %s1584_s18 = scalar_select %p53_p12, %s1417_s25, %s55_s17  }
  0x28   : > { %p64_p5 = por %p63_p0, %p62_p13  ;;  %p1588_p7 = por %p223_p2, %p62_p13 }
  0x29   : > { %1772 = sst [smem:[#allocation22_spill]] %s1584_s18  ;;  %s297_s16 = sand.u32 1, %s1417_s25  }
  0x2a   : > { %s1037_s22 = sshll.u32 %s1421_s2, 3  ;;  %s910_s23 = sshll.u32 %s297_s16, 3 }
  0x2b   : > { %s1774_s3 = sld [smem:[#allocation23_spill]]  ;;  %s301_s12 = scalar_lea.vmem [#allocation6], %s910_s23 }
  0x2c   : > { %s309_s15 = sshll.u32 %s301_s12, 4  ;;  %p1599_p9 = pnand %p1107_p3, %p64_p5  ;;  %s310_s15 = int_to_ptr.vmem [resolvable:$true] %s309_s15 }
  0x2d   : > { %s328_s5 = scalar_lea.hbm %s1748_s4, %s1037_s22  ;;  %s323_s7 = scalar_lea.vmem [#allocation9], %s910_s23 }
  0x2e   : > { %s1606_s8 = sshll.u32 %s323_s7, 4  ;;  %s329_s24 = sshll.u32 %s328_s5, 4  ;;  %s330_s24 = int_to_ptr.hbm [resolvable:$true] %s329_s24  ;;  %s332_s8 = int_to_ptr.vmem [resolvable:$true] %s1606_s8 }
  0x2f   : > { %s298_s27 = scalar_lea.sflag [#allocation7], %s297_s16  ;;  %p1285_p10 = pneg %p1599_p9 }
  0x31   : > { %s306_s30 = scalar_lea.hbm %s1774_s3, %s1037_s22  ;;  %s1288_s21 = scalar_lea.hbm %s1774_s3, 16 }
  0x32   : > { %s307_s11 = sshll.u32 %s306_s30, 4  ;;  %s308_s11 = int_to_ptr.hbm [resolvable:$true] %s307_s11 }
  0x33   : > { %s1281_s30 = sshra.s32 %s308_s11, 4  ;;  %s1282_s30 = int_to_ptr.hbm [resolvable:$true] %s1281_s30 }
  0x34   : > { %s1283_s12 = scalar_lea.hbm %s1282_s30, 8  ;;  %p1289_p0 = scmp.lt.s32.totalorder %s1282_s30, %s1774_s3 }
  0x35   : > { %p1284_p2 = scmp.ne.s32.totalorder %s1282_s30, %s1283_s12  ;;  %p1290_p3 = scmp.lt.s32.totalorder %s1288_s21, %s1283_s12 }
  0x37   : > { %p1286_p12 = pnand %p1285_p10, %p1284_p2  ;;  %p1291_p5 = por %p1290_p3, %p1289_p0 }
  0x39   : > { %p1287_p13 = pneg %p1286_p12 }
  0x3b   : > { %p1292_p11 = pnand %p1291_p5, %p1287_p13 }
  0x3d   : > { %1295 = shalt.err (!%p1292_p11)
}
  0x3e   : > { %s1776_s5 = smov 4   ;;  %s1777_s7 = smov 64  }
  0x3f   : > { %1096 = dma.hbm_to_vmem [thread:$0]  (!%p1599_p9), %s308_s11, 128, %s310_s15, %s298_s27, %s1777_s7, %s1777_s7, %s1776_s5  }
  0x40   : > { %s319_s18 = sand.u32 1, %s1421_s2   ;;  %s1311_s20 = sshra.s32 %s330_s24, 4  ;;  %s1312_s20 = int_to_ptr.hbm [resolvable:$true] %s1311_s20 }
  0x41   : > { %s320_s16 = scalar_lea.sflag [#allocation10], %s319_s18  ;;  %s1313_s30 = scalar_lea.hbm %s1312_s20, 8 }
  0x42   : > { %p1314_p2 = scmp.ne.s32.totalorder %s1312_s20, %s1313_s30  ;;  %s1318_s22 = scalar_lea.hbm %s1748_s4, 16 }
  0x43   : > { %p1319_p13 = scmp.lt.s32.totalorder %s1312_s20, %s1748_s4  ;;  %p1320_p0 = scmp.lt.s32.totalorder %s1318_s22, %s1313_s30 }
  0x44   : > { %p1316_p11 = pnand %p1314_p2, %p1285_p10 }
  0x45   : > { %p1321_p3 = por %p1320_p0, %p1319_p13 }
  0x46   : > { %p1317_p12 = pneg %p1316_p11 }
  0x48   : > { %p1322_p5 = pnand %p1321_p3, %p1317_p12 }
  0x4a   : > { %1325 = shalt.err (!%p1322_p5)
}
  0x4b   : > { %1099 = dma.hbm_to_vmem [thread:$0]  (!%p1599_p9), %s330_s24, 128, %s332_s8, %s320_s16, %s1777_s7, %s1777_s7, %s1776_s5  }
  0x4c   : > { %343 = sbr.rel (%p1539_p8) target bundleno = 706 (0x2c2), region = 48  ;;  %s1643_s11 = sand.u32 (!%p1539_p8), 1, %s1413_s1  }
  0x4d   : > { %s917_s3 = sshll.u32 (!%p1539_p8), %s1643_s11, 3  ;;  %s346_s15 = scalar_lea.sflag (!%p1539_p8), [#allocation7], %s1643_s11 }
  0x4e   : > { %s1647_s27 = scalar_lea.vmem (!%p1539_p8), [#allocation6], %s917_s3 }
  0x51   : > { %1388 = dma.done.wait (%p1526_p4), %s346_s15, 128  }
  0x52   : > { %1390 = vsyncadd (%p1526_p4), %s346_s15, 4294967168  ;;  %s355_s8 = sand.u32 1, %s1517_s26   ;;  %s1654_s17 = scalar_lea.vmem [#allocation9], %s917_s3 }
  0x53   : > { %s356_s13 = scalar_lea.sflag [#allocation10], %s355_s8 }
  0x54   : > { %1392 = dma.done.wait (%p1526_p4), %s356_s13, 128  }
  0x55   : > { %1394 = vsyncadd (%p1526_p4), %s356_s13, 4294967168 }
  0x56   : > { %1396 = dma.done.wait (%p69_p1), [#allocation10], 1024  }
  0x57   : > { %1398 = vsyncadd (%p69_p1), [#allocation10], 4294966272 }
  0x58   : > { %1400 = dma.done.wait (%p69_p1), [#allocation13], 2048  }
  0x59   : > { %1402 = vsyncadd (%p69_p1), [#allocation13], 4294965248  ;;  %v1048_v0 = vld [vmem:[#allocation11 + $0x38] sm:$0xff]  ;;  %v1047_v1 = vld [vmem:[#allocation11 + $0x30] sm:$0xff]  ;;  %vm529_vm0 = vcmask 130048   ;;  %s419_s28 = sld [smem:[#allocation5 + %s1517_s26]]  ;;  %v416_v22 = vlaneseq }
  0x5a   : > { %505 = vmatpush.bf16.msra.mxu0 %v1048_v0  ;;  %v1046_v2 = vld [vmem:[#allocation11 + $0x28] sm:$0xff]  ;;  %v1045_v3 = vld [vmem:[#allocation11 + $0x20] sm:$0xff]  ;;  %v1044_v4 = vld [vmem:[#allocation11 + $0x18] sm:$0xff]  ;;  %v1431_v27 = vmov 0.0   ;;  %s922_s7 = sshll.u32 %s1643_s11, 1  ;;  %s427_s16 = sld [smem:[#allocation3 + %s1517_s26]] }
  0x5b   : > { %v1043_v5 = vld [vmem:[#allocation11 + $0x10] sm:$0xff]  ;;  %v1042_v6 = vld [vmem:[#allocation11 + $0x8] sm:$0xff]  ;;  %v1041_v7 = vld [vmem:[#allocation11] sm:$0xff]  ;;  %v1675_v24 = vshrl.u32 %v416_v22, 7  ;;  %vm1689_vm3 = vcmp.lt.s32.totalorder %v416_v22, 128  ;;  %s1693_s18 = scalar_lea.vmem [#allocation15], %s922_s7 }
  0x5c   : > { %v1039_v8 = vld [vmem:[%s1647_s27] sm:$0xff]  ;;  %v1056_v9 = vld [vmem:[#allocation14 + $0x38] sm:$0xff]  ;;  %v1055_v11 = vld [vmem:[#allocation14 + $0x30] sm:$0xff]  ;;  %s758_s12 = sld [smem:[#allocation4 + %s1517_s26]]  ;;  %s1034_s21 = sshll.u32 %s1517_s26, 1 }
  0x5d   : > { %v1064_v10 = vld [vmem:[#allocation12 + $0x38] sm:$0xff]  ;;  %624 = vmatpush.bf16.msra.mxu2 %v1056_v9  ;;  %v1063_v12 = vld [vmem:[#allocation12 + $0x30] sm:$0xff]  ;;  %v1054_v13 = vld [vmem:[#allocation14 + $0x28] sm:$0xff]  ;;  %v1680_v26 = vadd.s32 8, %v1675_v24  ;;  %s778_s3 = scalar_lea.hbm %s1754_s10, %s1034_s21  ;;  %s780_s15 = sshll.u32 %s1693_s18, 4  ;;  %s781_s15 = int_to_ptr.vmem [resolvable:$true] %s780_s15 }
  0x5e   : > { %506 = vmatpush.bf16.msra.mxu0 %v1047_v1  ;;  %705 = vmatpush.bf16.msra.mxu3 %v1064_v10  ;;  %v1062_v14 = vld [vmem:[#allocation12 + $0x28] sm:$0xff]  ;;  %v1053_v15 = vld [vmem:[#allocation14 + $0x20] sm:$0xff]  ;;  %v1052_v17 = vld [vmem:[#allocation14 + $0x18] sm:$0xff]  ;;  %s768_s8 = scalar_lea.sflag [#allocation8], %s1643_s11  ;;  %s1361_s24 = scalar_lea.hbm %s1754_s10, 4 }
  0x5f   : > { %v1061_v16 = vld [vmem:[#allocation12 + $0x20] sm:$0xff]  ;;  %v1670_v21 = vld [vmem:[%s1654_s17] sm:$0xff]  ;;  %v420_v23 = vstv %s419_s28  ;;  %v1050_v41 = vld [vmem:[#allocation14 + $0x8] sm:$0xff] }
  0x60   : > { %vm421_vm1 = vcmp.eq.s32.totalorder %v1675_v24, %v420_v23  ;;  %v412_v25 = vld [vmem:[%s1647_s27] sm:$0xff]   ;;  %vm422_vm2 = vcmp.eq.s32.totalorder %v1680_v26, %v420_v23  ;;  %v1060_v36 = vld [vmem:[#allocation12 + $0x18] sm:$0xff]  ;;  %v1051_v38 = vld [vmem:[#allocation14 + $0x10] sm:$0xff]  ;;  %s782_s27 = sshll.u32 %s778_s3, 4  ;;  %s783_s27 = int_to_ptr.hbm [resolvable:$true] %s782_s27 }
  0x61   : > { %625 = vmatpush.bf16.msra.mxu2 %v1055_v11  ;;  %v923_v28 = vsel %vm421_vm1, 1.0, %v1431_v27  ;;  %v547_v29 = vunpack.c.l.bf16 %v412_v25  ;;  %v548_v30 = vunpack.c.h.bf16 %v412_v25  ;;  %v924_v31 = vsel %vm422_vm2, 1.0, %v1431_v27  ;;  %v1059_v40 = vld [vmem:[#allocation12 + $0x10] sm:$0xff]  ;;  %v1058_v44 = vld [vmem:[#allocation12 + $0x8] sm:$0xff]  ;;  %v1049_v46 = vld [vmem:[#allocation14] sm:$0xff]  ;;  %s1355_s26 = sshra.s32 %s783_s27, 4  ;;  %s1356_s26 = int_to_ptr.hbm [resolvable:$true] %s1355_s26 }
  0x62   : > { %507 = vmatpush.bf16.msra.mxu0 %v1046_v2  ;;  %706 = vmatpush.bf16.msra.mxu3 %v1063_v12  ;;  %v1057_v48 = vld [vmem:[#allocation12] sm:$0xff]  ;;  %s1357_s13 = scalar_lea.hbm %s1356_s26, 2  ;;  %p1362_p9 = scmp.lt.s32.totalorder %s1356_s26, %s1754_s10 }
  0x63   : > { %v549_v32 = vmul.f32 %v923_v28, %v547_v29  ;;  %v550_v33 = vmul.f32 %v924_v31, %v548_v30  ;;  %v1153_v51 = vld [vmem:[%s1750_s6] ss:$0 sm:$0xff]  ;;  %p1358_p1 = scmp.ne.s32.totalorder %s1356_s26, %s1357_s13  ;;  %p1363_p10 = scmp.lt.s32.totalorder %s1361_s24, %s1357_s13 }
  0x65   : > { %626 = vmatpush.bf16.msra.mxu2 %v1054_v13  ;;  %v551_v34 = vadd.f32 %v550_v33, %v549_v32  ;;  %v1154_v13 = vld [vmem:[%s1753_s9] ss:$0 sm:$0xff]  ;;  %p1359_p4 = pnand %p1358_p1, %p1588_p7  ;;  %p1364_p2 = por %p1363_p10, %p1362_p9 }
  0x66   : > { %508 = vmatpush.bf16.msra.mxu0 %v1045_v3  ;;  %707 = vmatpush.bf16.msra.mxu3 %v1062_v14  ;;  %v428_v14 = vstv %s427_s16 }
  0x67   : > { %v552_v35 = vrot.slane %v551_v34, 4  ;;  %vm429_vm4 = vcmp.lt.s32.totalorder %v1675_v24, %v428_v14  ;;  %vm430_vm5 = vcmp.lt.s32.totalorder %v1680_v26, %v428_v14  ;;  %p1360_p8 = pneg %p1359_p4 }
  0x69   : > { %627 = vmatpush.bf16.msra.mxu2 %v1053_v15  ;;  %v553_v37 = vadd.f32 %v552_v35, %v551_v34  ;;  %p1365_p11 = pnand %p1364_p2, %p1360_p8 }
  0x6a   : > { %509 = vmatpush.bf16.msra.mxu0 %v1044_v4  ;;  %708 = vmatpush.bf16.msra.mxu3 %v1061_v16 }
  0x6b   : > { %v554_v39 = vrot.slane %v553_v37, 2 }
  0x6d   : > { %628 = vmatpush.bf16.msra.mxu2 %v1052_v17  ;;  %v555_v42 = vadd.f32 %v554_v39, %v553_v37 }
  0x6e   : > { %510 = vmatpush.bf16.msra.mxu0 %v1043_v5  ;;  %709 = vmatpush.bf16.msra.mxu3 %v1060_v36 }
  0x6f   : > { %v556_v43 = vrot.slane %v555_v42, 1 }
  0x71   : > { %629 = vmatpush.bf16.msra.mxu2 %v1051_v38  ;;  %v557_v45 = vadd.f32 %v556_v43, %v555_v42 }
  0x72   : > { %511 = vmatpush.bf16.msra.mxu0 %v1042_v6  ;;  %710 = vmatpush.bf16.msra.mxu3 %v1059_v40 }
  0x73   : > { %v558_v47 = vmax.f32 %v557_v45, 0.0 }
  0x75   : > { %630 = vmatpush.bf16.msra.mxu2 %v1050_v41  ;;  %v559_v49 = vpack.c.bf16 %v558_v47, %v558_v47 }
  0x76   : > { %512 = vmatpush.bf16.msra.mxu0 %v1041_v7  ;;  %711 = vmatpush.bf16.msra.mxu3 %v1058_v44 }
  0x79   : > { %513 = vmatmul.bf16.vlgmr.msra.gmra.mxu0 %v1039_v8  ;;  %631 = vmatpush.bf16.msra.mxu2 %v1049_v46 }
  0x7a   : > { %712 = vmatpush.bf16.msra.mxu3 %v1057_v48 }
  0x7c   : > { %632 = vmatmul.bf16.vlgmr.msra.gmra.mxu2 %v559_v49 }
  0xf6   : > { %v514_v18 = vpop.f32.mrf.mxu0 }
  0xfe   : > { %v516_v19 = vpop.f32.mrf.mxu0 }
  0xff   : > { %v519_v20 = vpack.c.bf16 %v516_v19, %v514_v18  ;;  %v633_v4 = vpop.f32.mrf.mxu2  ;;  %v925_v19 = vsel %vm429_vm4, 1.0, %v1431_v27 }
 0x100   : > { %v656_v7 = vperm.slane %v633_v4, 0 }
 0x101   : > { %540 = vmatpush.bf16.msra.mxu1 %v519_v20  ;;  %v926_v20 = vsel %vm430_vm5, 1.0, %v1431_v27 }
 0x104   : > { %967 = vmatmul.msk.bf16.vlgmr.msra.gmra.mxu1 %vm529_vm0, %v1670_v21 }
 0x107   : > { %v635_v5 = vpop.f32.mrf.mxu2 }
 0x181   : > { %v542_v50 = vpop.f32.mrf.mxu1 }
 0x182   : > { %v543_v52 = vadd.f32 %v1153_v51, %v542_v50 }
 0x184   : > { %v637_v55 = vmax.f32 %v543_v52, 0.0  ;;  %v740_v56 = vmul.f32 %v923_v28, %v543_v52 }
 0x189   : > { %v544_v53 = vpop.f32.mrf.mxu1 }
 0x18a   : > { %v545_v54 = vadd.f32 %v1153_v51, %v544_v53 }
 0x18c   : > { %v638_v57 = vmax.f32 %v545_v54, 0.0  ;;  %v741_v58 = vmul.f32 %v924_v31, %v545_v54  ;;  %v759_v31 = vstv %s758_s12 }
 0x18e   : > { %v742_v59 = vadd.f32 %v741_v58, %v740_v56  ;;  %v639_v60 = vpack.c.bf16 %v638_v57, %v637_v55 }
 0x190   : > { %v743_v61 = vrot.slane %v742_v59, 4  ;;  %713 = vmatmul.bf16.vlgmr.msra.gmra.mxu3 %v639_v60 }
 0x192   : > { %v744_v62 = vadd.f32 %v743_v61, %v742_v59 }
 0x194   : > { %v745_v63 = vrot.slane %v744_v62, 2 }
 0x196   : > { %v746_v0 = vadd.f32 %v745_v63, %v744_v62 }
 0x198   : > { %v747_v1 = vrot.slane %v746_v0, 1 }
 0x19a   : > { %v748_v3 = vadd.f32 %v747_v1, %v746_v0 }
 0x19c   : > { %766 = vst.msk [vmem:[%s1693_s18 + $0x1] sm:$0x1] %vm1689_vm3, %v748_v3 }
 0x213   : > { %v714_v6 = vpop.f32.mrf.mxu3 }
 0x214   : > { %v715_v9 = vadd.f32 %v714_v6, %v656_v7 }
 0x21b   : > { %v716_v8 = vpop.f32.mrf.mxu3 }
 0x21c   : > { %v717_v10 = vadd.f32 %v716_v8, %v656_v7 }
 0x21e   : > { %v719_v11 = vpack.c.bf16 %v717_v10, %v715_v9 }
 0x220   : > { %731 = vmatpush.bf16.msrb.mxu1 %v719_v11 }
 0x223   : > { %1032 = vmatmul.msk.bf16.vlgmr.msrb.gmra.mxu1 %vm529_vm0, %v1670_v21 }
 0x2a0   : > { %v733_v12 = vpop.f32.mrf.mxu1 }
 0x2a1   : > { %v734_v15 = vadd.f32 %v1154_v13, %v733_v12 }
 0x2a3   : > { %v738_v17 = vmax.f32 %v734_v15, 0.0 }
 0x2a5   : > { %v749_v22 = vmul.f32 %v925_v19, %v738_v17 }
 0x2a8   : > { %v735_v16 = vpop.f32.mrf.mxu1 }
 0x2a9   : > { %v736_v18 = vadd.f32 %v1154_v13, %v735_v16 }
 0x2ab   : > { %v739_v21 = vmax.f32 %v736_v18, 0.0 }
 0x2ad   : > { %v750_v23 = vmul.f32 %v926_v20, %v739_v21 }
 0x2af   : > { %v751_v25 = vadd.f32 %v750_v23, %v749_v22 }
 0x2b1   : > { %v752_v28 = vrot.slane %v751_v25, 4 }
 0x2b3   : > { %v753_v29 = vadd.f32 %v752_v28, %v751_v25 }
 0x2b5   : > { %v754_v24 = vrot.slane %v753_v29, 2 }
 0x2b7   : > { %v755_v26 = vadd.f32 %v754_v24, %v753_v29 }
 0x2b9   : > { %v756_v30 = vrot.slane %v755_v26, 1 }
 0x2bb   : > { %v757_v27 = vadd.f32 %v756_v30, %v755_v26 }
 0x2bd   : > { %v760_v32 = vmul.f32 %v759_v31, %v757_v27 }
 0x2bf   : > { %765 = vst.msk [vmem:[%s1693_s18] sm:$0x1] %vm1689_vm3, %v760_v32 }
 0x2c0   : > { %1368 = shalt.err (!%p1365_p11)
}
 0x2c1   : > { %1081 = dma.vmem_to_hbm [thread:$0]  (%p1588_p7), %s781_s15, 32, %s783_s27, %s768_s8  }
 0x2c2 PF: > { %s794_s11 = sand.u32 1, %s1409_s0   ;;  %p1780_p12 = scmp.ge.s32.totalorder %s1421_s2, 2 }
 0x2c3   : > { %s795_s18 = scalar_lea.sflag [#allocation8], %s794_s11 }
 0x2c4   : > { %p1101_p13 = pnand %p1780_p12, %p1531_p6 }
 0x2c6   : > { %p1102_p0 = pneg %p1101_p13 }
 0x2c8   : > { %1404 = dma.done.wait (%p1102_p0), %s795_s18, 32  }
 0x2c9   : > { %1406 = vsyncadd (%p1102_p0), %s795_s18, 4294967264  ;;  %s1781_s16 = sld [smem:[#allocation22_spill]]  ;;  %p45_p3 = scmp.ge.s32.totalorder %s1569_s14, 4  }
 0x2ca   : > { %s1782_s0 = smov %s1413_s1  ;;  %s1783_s1 = smov %s1417_s25 }
 0x2cb   : > { %s1785_s2 = smov %s1569_s14  ;;  %47 = sbr.rel (!%p45_p3) target bundleno = 19 (0x13), region = 118 }
 0x2cf   : > { %s1784_s25 = smov %s1781_s16 }
 0x2d0   :  { %801 = vsyncpa [#allocation7], 1 }
 0x2d1   :  { %803 = vsyncpa [#allocation7 + $0x1], 1 }
 0x2d2   :  { %804 = vsyncpa [#allocation10], 1 }
 0x2d3   :  { %806 = vsyncpa [#allocation10 + $0x1], 1 }
 0x2d4   :  { %807 = vsyncpa [#allocation13], 1 }
 0x2d5   :  { %808 = vsyncpa [#allocation8], 1 }
 0x2d6   :  { %810 = vsyncpa [#allocation8 + $0x1], 1 }

</bundles_post_ra>
